<compile_context>
chip_gen: v5e
topology: v5e:2x2
jax: 0.10.0
libtpu: 0.0.40
codegen_flags: <defaults>
</compile_context>

<pallas_src>
import jax
import jax.numpy as jnp
from jax.experimental import pallas as pl
from jax.experimental.pallas import tpu as pltpu


def cnn_kernel(x_ref, tw_ref, cb_ref, fcw_ref, fcb_ref, o_ref):
    # x_ref:   (TB, L*C)       tile of flattened input rows
    # tw_ref:  (L*C, F*L_out)  Toeplitz-expanded conv weight (grid-resident)
    # cb_ref:  (1, F*L_out)    conv bias repeated per output position
    # fcw_ref: (1, F*L_out)    fc weight row (torch Flatten order)
    # fcb_ref: (1, 1)          fc bias
    # o_ref:   (1, TB)         lane-dense per-tile output row
    x = x_ref[...].astype(jnp.float32)                       # (TB, L*C)

    # Conv1d (+ bias) + ReLU, fused, as one MXU matmul over the whole tile.
    conv = jnp.dot(x, tw_ref[...], preferred_element_type=jnp.float32)
    act = jnp.maximum(conv + cb_ref[...], 0.0)               # (TB, F*L_out)

    # Linear(F*L_out -> 1): contract the flattened-feature axis of BOTH
    # operands ("A @ B.T" style) so the result is directly (1, TB), lane-dense.
    out_row = jax.lax.dot_general(
        fcw_ref[...], act,
        dimension_numbers=(((1,), (1,)), ((), ())),
        preferred_element_type=jnp.float32)                  # (1, TB)
    o_ref[...] = out_row + fcb_ref[...]


def prepare_params(conv_w, conv_b, fc_w, fc_b, lookback):
    """One-time parameter prep (casts + conv->matmul Toeplitz expansion)."""
    conv_w = jnp.asarray(conv_w, jnp.float32)                # (F, C, K)
    conv_b = jnp.asarray(conv_b, jnp.float32)                # (F,)
    fc_w = jnp.asarray(fc_w, jnp.float32)                    # (1, F*L_out)
    fc_b = jnp.asarray(fc_b, jnp.float32)                    # (1,)

    F, C, K = conv_w.shape
    L = lookback
    L_out = L - K + 1
    FL = F * L_out

    # w_flat[k*C + c, f] = conv_w[f, c, k]
    w_flat = jnp.transpose(conv_w, (2, 1, 0)).reshape(K * C, F)
    # T3[(t+k)*C + c, f, t] = conv_w[f, c, k]
    t3 = jnp.zeros((L * C, F, L_out), jnp.float32)
    for t in range(L_out):                                   # one-time prep
        t3 = t3.at[t * C: t * C + K * C, :, t].set(w_flat)
    tw = t3.reshape(L * C, FL)                               # (L*C, F*L_out)

    cb_row = jnp.repeat(conv_b, L_out).reshape(1, FL)        # bias in flat order
    fcw_row = fc_w.reshape(1, FL)
    fcb = fc_b.reshape(1, 1)
    return tw, cb_row, fcw_row, fcb


def cnn_forward(x, params, *, tb_max=512):
    """x: (B, LOOKBACK, C) as in the torch module. Returns (B, 1)."""
    tw, cb_row, fcw_row, fcb = params
    B, L, C = x.shape
    LC, FL = tw.shape
    assert L * C == LC, (L, C, LC)

    x2 = x.reshape(B, LC)                 # free reshape, no data movement
    TB = B if B <= tb_max else tb_max     # batch tile (lane width of output)
    num_tiles = pl.cdiv(B, TB)

    out = pl.pallas_call(
        cnn_kernel,
        out_shape=jax.ShapeDtypeStruct((num_tiles, TB), jnp.float32),
        grid=(num_tiles,),
        in_specs=[
            pl.BlockSpec((TB, LC), lambda i: (i, 0)),   # batch tile of x
            pl.BlockSpec((LC, FL), lambda i: (0, 0)),   # weights: resident
            pl.BlockSpec((1, FL), lambda i: (0, 0)),
            pl.BlockSpec((1, FL), lambda i: (0, 0)),
            pl.BlockSpec((1, 1), lambda i: (0, 0)),
        ],
        out_specs=pl.BlockSpec((1, TB), lambda i: (i, 0)),
        compiler_params=pltpu.CompilerParams(
            dimension_semantics=("parallel",),          # v7x: 2 TCs split tiles
            vmem_limit_bytes=32 * 1024 * 1024,          # explicit; safe on v5e/v6e/v7x
        ),
    )(x2, tw, cb_row, fcw_row, fcb)

    # (num_tiles, TB) slab -> (B, 1); rows past B (partial last tile) are dropped.
    return out.reshape(-1)[:B].reshape(B, 1)


def reference_forward(x, conv_w, conv_b, fc_w, fc_b):
    """Plain-JAX reference mirroring the PyTorch forward exactly."""
    B, L, C = x.shape
    F, _, K = conv_w.shape
    L_out = L - K + 1
    x_ncl = jnp.transpose(x, (0, 2, 1))                          # (B, C, L)
    patches = jnp.stack([x_ncl[:, :, k:k + L_out] for k in range(K)], axis=-1)
    conv = jnp.einsum('bclk,fck->bfl', patches, conv_w) + conv_b[None, :, None]
    relu = jnp.maximum(conv, 0.0)
    flat = relu.reshape(B, F * L_out)                            # torch Flatten order
    return flat @ fc_w.T + fc_b[None, :]


if __name__ == "__main__":
    # Small shapes consistent with the module:
    # input_size (features) = 4, LOOKBACK = 16, num_filters = 8, kernel_size = 3
    B, LOOKBACK, C = 2, 16, 4
    F, K = 8, 3
    L_out = LOOKBACK - K + 1

    key = jax.random.PRNGKey(0)
    kx, kcw, kcb, kfw, kfb, kx2 = jax.random.split(key, 6)

    x = jax.random.normal(kx, (B, LOOKBACK, C), dtype=jnp.float32)
    conv_w = 0.1 * jax.random.normal(kcw, (F, C, K), dtype=jnp.float32)
    conv_b = 0.1 * jax.random.normal(kcb, (F,), dtype=jnp.float32)
    fc_w = 0.1 * jax.random.normal(kfw, (1, F * L_out), dtype=jnp.float32)
    fc_b = 0.1 * jax.random.normal(kfb, (1,), dtype=jnp.float32)

    params = prepare_params(conv_w, conv_b, fc_w, fc_b, LOOKBACK)

    # Check 1: tiny batch (single tile, block == array).
    out = jax.block_until_ready(cnn_forward(x, params))
    ref = reference_forward(x, conv_w, conv_b, fc_w, fc_b)
    assert out.shape == (B, 1), out.shape
    assert jnp.allclose(out, ref, atol=1e-4, rtol=1e-4), (out, ref)

    # Check 2: larger batch exercising the batch-tiled grid (multiple tiles,
    # partial last tile handled by Pallas edge masking + wrapper slice).
    B2 = 640
    x2 = jax.random.normal(kx2, (B2, LOOKBACK, C), dtype=jnp.float32)
    out2 = jax.block_until_ready(cnn_forward(x2, params))
    ref2 = reference_forward(x2, conv_w, conv_b, fc_w, fc_b)
    assert out2.shape == (B2, 1), out2.shape
    assert jnp.allclose(out2, ref2, atol=1e-4, rtol=1e-4)

    print("KERNEL_OK")
</pallas_src>

<mosaic_0001>
module attributes {stable_mosaic.version = 11 : i64} {
  func.func @cnn_kernel(%arg0: i32, %arg1: memref<2x64xf32, #tpu.memory_space<vmem>>, %arg2: memref<64x112xf32, #tpu.memory_space<vmem>>, %arg3: memref<1x112xf32, #tpu.memory_space<vmem>>, %arg4: memref<1x112xf32, #tpu.memory_space<vmem>>, %arg5: memref<1x1xf32, #tpu.memory_space<vmem>>, %arg6: memref<1x2xf32, #tpu.memory_space<vmem>>) attributes {dimension_semantics = [#tpu.dimension_semantics<parallel>], iteration_bounds = array<i64: 1>, scalar_prefetch = 0 : i64, scratch_operands = 0 : i64, tpu.core_type = #tpu.core_type<tc>, window_params = [{transform_indices = @transform_0, window_bounds = array<i64: 2, 64>}, {pipeline_mode = #tpu.pipeline_mode<synchronous>, transform_indices = @transform_1, window_bounds = array<i64: 64, 112>}, {pipeline_mode = #tpu.pipeline_mode<synchronous>, transform_indices = @transform_2, window_bounds = array<i64: 1, 112>}, {pipeline_mode = #tpu.pipeline_mode<synchronous>, transform_indices = @transform_3, window_bounds = array<i64: 1, 112>}, {pipeline_mode = #tpu.pipeline_mode<synchronous>, transform_indices = @transform_4, window_bounds = array<i64: 1, 1>}, {transform_indices = @transform_5, window_bounds = array<i64: 1, 2>}]} {
    %c0 = arith.constant 0 : index
    %c0_0 = arith.constant 0 : index
    %0 = vector.load %arg1[%c0, %c0_0] : memref<2x64xf32, #tpu.memory_space<vmem>>, vector<2x64xf32>
    %c0_1 = arith.constant 0 : index
    %c0_2 = arith.constant 0 : index
    %1 = vector.load %arg2[%c0_1, %c0_2] : memref<64x112xf32, #tpu.memory_space<vmem>>, vector<64x112xf32>
    %cst = arith.constant dense<0.000000e+00> : vector<2x112xf32>
    %2 = tpu.matmul %0, %1, %cst {dimension_numbers = #tpu.dot_dimension_numbers<[1], [0], [0], [1], [0, 0, 1, 1], [], []>} : vector<2x64xf32>, vector<64x112xf32>, vector<2x112xf32> -> vector<2x112xf32>
    %c0_3 = arith.constant 0 : index
    %c0_4 = arith.constant 0 : index
    %3 = vector.load %arg3[%c0_3, %c0_4] : memref<1x112xf32, #tpu.memory_space<vmem>>, vector<1x112xf32>
    %4 = vector.broadcast %3 : vector<1x112xf32> to vector<2x112xf32>
    %5 = arith.addf %2, %4 : vector<2x112xf32>
    %cst_5 = arith.constant 0.000000e+00 : f32
    %6 = vector.broadcast %cst_5 : f32 to vector<2x112xf32>
    %7 = arith.maximumf %5, %6 : vector<2x112xf32>
    %c0_6 = arith.constant 0 : index
    %c0_7 = arith.constant 0 : index
    %8 = vector.load %arg4[%c0_6, %c0_7] : memref<1x112xf32, #tpu.memory_space<vmem>>, vector<1x112xf32>
    %cst_8 = arith.constant dense<0.000000e+00> : vector<1x2xf32>
    %9 = tpu.matmul %8, %7, %cst_8 {dimension_numbers = #tpu.dot_dimension_numbers<[1], [1], [0], [0], [0, 0, 1, 0], [], []>} : vector<1x112xf32>, vector<2x112xf32>, vector<1x2xf32> -> vector<1x2xf32>
    %c0_9 = arith.constant 0 : index
    %c0_10 = arith.constant 0 : index
    %10 = vector.load %arg5[%c0_9, %c0_10] : memref<1x1xf32, #tpu.memory_space<vmem>>, vector<1x1xf32>
    %11 = vector.broadcast %10 : vector<1x1xf32> to vector<1x2xf32>
    %12 = arith.addf %9, %11 : vector<1x2xf32>
    %c0_11 = arith.constant 0 : index
    %c0_12 = arith.constant 0 : index
    %13 = vector.load %arg6[%c0_11, %c0_12] : memref<1x2xf32, #tpu.memory_space<vmem>>, vector<1x2xf32>
    tpu.vector_store %arg6[%c0_11, %c0_12], %12 {strides = array<i32>} : memref<1x2xf32, #tpu.memory_space<vmem>>, vector<1x2xf32>,
    return
  }
  func.func @transform_0(%arg0: i32) -> (i32, i32) {
    %c0_i32 = arith.constant 0 : i32
    %c0_i32_0 = arith.constant 0 : i32
    return %arg0, %c0_i32 : i32, i32
  }
  func.func @transform_1(%arg0: i32) -> (i32, i32) {
    %c0_i32 = arith.constant 0 : i32
    %c0_i32_0 = arith.constant 0 : i32
    %c0_i32_1 = arith.constant 0 : i32
    return %c0_i32, %c0_i32_0 : i32, i32
  }
  func.func @transform_2(%arg0: i32) -> (i32, i32) {
    %c0_i32 = arith.constant 0 : i32
    %c0_i32_0 = arith.constant 0 : i32
    %c0_i32_1 = arith.constant 0 : i32
    return %c0_i32, %c0_i32_0 : i32, i32
  }
  func.func @transform_3(%arg0: i32) -> (i32, i32) {
    %c0_i32 = arith.constant 0 : i32
    %c0_i32_0 = arith.constant 0 : i32
    %c0_i32_1 = arith.constant 0 : i32
    return %c0_i32, %c0_i32_0 : i32, i32
  }
  func.func @transform_4(%arg0: i32) -> (i32, i32) {
    %c0_i32 = arith.constant 0 : i32
    %c0_i32_0 = arith.constant 0 : i32
    %c0_i32_1 = arith.constant 0 : i32
    return %c0_i32, %c0_i32_0 : i32, i32
  }
  func.func @transform_5(%arg0: i32) -> (i32, i32) {
    %c0_i32 = arith.constant 0 : i32
    %c0_i32_0 = arith.constant 0 : i32
    return %arg0, %c0_i32 : i32, i32
  }
}

</mosaic_0001>

<bundles_post_ra>
// kernel: tpu_custom_call.1
= control target key start
LH: loop header
LB: loop body
LE: loop exit
PB: predicated region body
PF: predicated region fallthrough
CT: control target
= control target key end

     0   :  { %s246_s0 = inlined_call_operand.vmem [shape: f32[2,64], index: 0, kind: input, shape index: {}]   ;;  %s247_s1 = inlined_call_operand.hbm [shape: f32[64,112], index: 1, kind: input, shape index: {}]   ;;  %s248_s2 = inlined_call_operand.vmem [shape: f32[1,112], index: 2, kind: input, shape index: {}]   ;;  %s249_s3 = inlined_call_operand.vmem [shape: f32[1,112], index: 3, kind: input, shape index: {}]   ;;  %s250_s4 = inlined_call_operand.<no memory space> [shape: f32[1,1], index: 4, kind: input, shape index: {}]   ;;  %s251_s5 = inlined_call_operand.hbm [shape: f32[1,2], index: 5, kind: output, shape index: {}]  }
   0x1   :  { %v10_v0 = vstv %s250_s4 }
   0x2   :  { %11 = vst [vmem:[#allocation2] sm:$0x1] %v10_v0 }
   0x3   :  { %12 = vsyncpa [#allocation4], 0 }
   0x4   :  { %13 = vsyncpa [#allocation5], 0  ;;  %s20_s22 = sshll.u32 %s247_s1, 4  ;;  %s193_s23 = smov [#allocation3]   ;;  %s21_s22 = int_to_ptr.hbm [resolvable:$true] %s20_s22 }
   0x5   :  { %s22_s24 = sshll.u32 %s193_s23, 4  ;;  %s194_s25 = smov 128   ;;  %s23_s24 = int_to_ptr.vmem [resolvable:$true] %s22_s24 }
   0x6   :  { %s195_s26 = smov 8  }
   0x7   :  { %28 = dma.hbm_to_vmem [thread:$0]  %s21_s22, 1024, %s23_s24, [#allocation4], %s194_s25, %s194_s25, %s195_s26  }
   0x8   :  { %189 = dma.done.wait [#allocation4], 1024  }
   0x9   :  { %190 = vsyncadd [#allocation4], 4294966272  ;;  %v47_v1 = vld [vmem:[#allocation3 + $0x38] sm:$0xff]  ;;  %v46_v2 = vld [vmem:[#allocation3 + $0x30] sm:$0xff]  ;;  %vm52_vm0 = vcmask 523264   ;;  %v196_v11 = vmov 0  }
   0xa   :  { %64 = vmatpush.msra.mxu0 %v47_v1  ;;  %v45_v3 = vld [vmem:[#allocation3 + $0x28] sm:$0xff]  ;;  %v44_v4 = vld [vmem:[#allocation3 + $0x20] sm:$0xff]  ;;  %v43_v5 = vld [vmem:[#allocation3 + $0x18] sm:$0xff]  ;;  %139 = vset.pattern.permute.xlu0 %v196_v11  ;;  %vm85_vm1 = vcmask 916480   ;;  %s121_s9 = sshll.u32 %s251_s5, 4  ;;  %vm112_vm2 = vcmask 8192   ;;  %s122_s9 = int_to_ptr.hbm [resolvable:$true] %s121_s9 }
   0xb   :  { %v42_v6 = vld [vmem:[#allocation3 + $0x10] sm:$0xff]  ;;  %v41_v7 = vld [vmem:[#allocation3 + $0x8] sm:$0xff]  ;;  %v40_v8 = vld [vmem:[#allocation3] sm:$0xff] }
   0xc   :  { %65 = vmatpush.msra.mxu0 %v46_v2  ;;  %v39_v9 = vld [vmem:[%s246_s0] sm:$0x3]  ;;  %s197_s0 = smov [#allocation6]  }
   0xd   :  { %v78_v10 = vld [vmem:[#allocation2] sm:$0x1]  ;;  %s119_s6 = sshll.u32 %s197_s0, 4  ;;  %s120_s6 = int_to_ptr.vmem [resolvable:$true] %s119_s6 }
   0xe   :  { %66 = vmatpush.msra.mxu0 %v45_v3  ;;  %81 = vperm.xlu0 %139, %v78_v10   ;;  %v140_v12 = vld [vmem:[%s248_s2] ss:$0 sm:$0xff] }
   0xf   :  { %v77_v16 = vld [vmem:[%s249_s3] sm:$0x1] }
  0x10   :  { %67 = vmatpush.msra.mxu0 %v44_v4 }
  0x12   :  { %68 = vmatpush.msra.mxu0 %v43_v5 }
  0x14   :  { %69 = vmatpush.msra.mxu0 %v42_v6 }
  0x16   :  { %70 = vmatpush.msra.mxu0 %v41_v7 }
  0x18   :  { %71 = vmatpush.msra.mxu0 %v40_v8 }
  0x19   :  { %131 = vmatmul.msk.f32.vlgmr.msra.gmra.mxu0 %vm52_vm0, %v39_v9 }
  0x80   :  { %v82_v17 = vpop.permute.xlu0 %81 }
  0x81   :  { %v84_v18 = vperm.slane %v82_v17, 0 }
  0x96   :  { %v73_v13 = vpop.f32.mrf.mxu0 }
  0x97   :  { %v74_v14 = vadd.f32 %v140_v12, %v73_v13 }
  0x99   :  { %v76_v15 = vmax.f32 %v74_v14, 0.0 }
  0x9b   :  { %132 = vmatpush.xpose.msk.msra.mxu1 %vm85_vm1, %v76_v15 }
  0x9e   :  { %133 = vmatmul.msk.f32.vlgmr.msra.gmra.mxu1 %vm85_vm1, %v77_v16 }
 0x11b   :  { %v109_v19 = vpop.f32.mrf.mxu1 }
 0x11c   :  { %v110_v20 = vadd.f32 %v109_v19, %v84_v18 }
 0x11e   :  { %113 = vst.msk [vmem:[#allocation6] sm:$0x1] %vm112_vm2, %v110_v20 }
 0x11f   :  { %124 = dma.vmem_to_hbm [thread:$0]  %s120_s6, 16, %s122_s9, [#allocation5]  }
 0x120   :  { %191 = dma.done.wait [#allocation5], 16  }
 0x121   :  { %192 = vsyncadd [#allocation5], 4294967280 }
 0x122   :  { %129 = vsyncpa [#allocation4], 1 }
 0x123   :  { %130 = vsyncpa [#allocation5], 1 }

</bundles_post_ra>
